<compile_context>
chip_gen: v6e
topology: v6e:2x2x1
jax: 0.10.0
libtpu: 0.0.40
codegen_flags: <defaults>
</compile_context>

<pallas_src>
import functools

import jax
import jax.numpy as jnp
from jax.experimental import pallas as pl
from jax.experimental.pallas import tpu as pltpu

_NEG_BIG = -1e30  # bias padding for fake classes -> exp() underflows to 0


def _disc2_kernel(h_ref, w_ref, b_ref, o_ref, acc_ref):
    """One grid step processes a (tB, tS, E) hidden slab.

    h_ref:   (tB, tS, E)  hidden-state tile (full embed dim on the lane axis)
    w_ref:   (E, Cp)      classifier weight (padded classes), loaded once
    b_ref:   (1, Cp)      classifier bias   (padded classes), loaded once
    o_ref:   (tB, Cp)     output log-probs (written on last sequence step)
    acc_ref: (tB, Cp) f32 running sum_S(hidden) @ W accumulator
    """
    s = pl.program_id(1)

    @pl.when(s == 0)
    def _():
        acc_ref[...] = jnp.zeros_like(acc_ref)

    # torch.sum(hidden, dim=1): pool this sequence tile in f32.
    pooled = jnp.sum(h_ref[...].astype(jnp.float32), axis=1)          # (tB, E)
    # Linear projection on the MXU; accumulate over sequence tiles.
    acc_ref[...] += jnp.dot(pooled, w_ref[...].astype(jnp.float32),
                            preferred_element_type=jnp.float32)       # (tB, Cp)

    @pl.when(s == pl.num_programs(1) - 1)
    def _():
        logits = acc_ref[...] + b_ref[...].astype(jnp.float32)        # (tB, Cp)
        # F.log_softmax(logits, dim=-1); padded classes carry -1e30 bias so
        # they contribute nothing to the max / sum-exp.
        m = jnp.max(logits, axis=-1, keepdims=True)
        z = logits - m
        lse = jnp.log(jnp.sum(jnp.exp(z), axis=-1, keepdims=True))
        o_ref[...] = (z - lse).astype(o_ref.dtype)


def _largest_tile(dim, max_tile, align=8):
    """Largest t <= max_tile with dim % t == 0 and (t == dim or t % align == 0)."""
    if dim <= max_tile:
        return dim
    t = (max_tile // align) * align
    while t >= align:
        if dim % t == 0:
            return t
        t -= align
    return dim  # fall back to the full extent


@functools.partial(
    jax.jit, static_argnames=("block_b", "block_s", "vmem_limit_bytes"))
def discriminator2_head(hidden, weight, bias, *, block_b=None, block_s=None,
                        vmem_limit_bytes=48 * 1024 * 1024):
    """Pallas implementation of: log_softmax(sum(hidden, axis=1) @ W + b).

    hidden: (B, S, E) float (f32 or bf16)
    weight: (E, C)    float   (note: transpose of torch.nn.Linear's (C, E))
    bias:   (C,)      float
    returns (B, C)    float32 log-probabilities
    """
    B, S, E = hidden.shape
    Ew, C = weight.shape
    assert Ew == E and bias.shape == (C,)

    itemsize = hidden.dtype.itemsize

    # Batch tile: parallel grid axis (v7x megacore); 8-aligned or full extent.
    if block_b is None:
        block_b = B if B <= 8 else _largest_tile(B, 8)
    # Sequence tile: sized so one hidden buffer stays within a modest VMEM
    # budget (double-buffered by the pipeline); 8-aligned or full extent.
    if block_s is None:
        budget_bytes = 8 * 1024 * 1024
        max_rows = max(8, budget_bytes // max(1, block_b * E * itemsize))
        block_s = _largest_tile(S, max_rows)

    assert B % block_b == 0 and (block_b == B or block_b % 8 == 0)
    assert S % block_s == 0 and (block_s == S or block_s % 8 == 0)

    # Pad classes to a lane-dense multiple of 128; fake classes get zero
    # weight columns and a very negative bias so the softmax ignores them.
    Cp = ((C + 127) // 128) * 128
    w_pad = jnp.zeros((E, Cp), weight.dtype).at[:, :C].set(weight)
    b_pad = jnp.full((1, Cp), _NEG_BIG, jnp.float32).at[0, :C].set(
        bias.astype(jnp.float32))

    grid = (B // block_b, S // block_s)

    cost = pl.CostEstimate(
        flops=2 * B * S * E + 2 * B * E * Cp,
        transcendentals=B * Cp,
        bytes_accessed=(B * S * E * itemsize
                        + E * Cp * w_pad.dtype.itemsize
                        + Cp * 4 + B * Cp * 4),
    )

    out_pad = pl.pallas_call(
        _disc2_kernel,
        out_shape=jax.ShapeDtypeStruct((B, Cp), jnp.float32),
        grid_spec=pltpu.PrefetchScalarGridSpec(
            num_scalar_prefetch=0,
            grid=grid,
            in_specs=[
                pl.BlockSpec((block_b, block_s, E), lambda b, s: (b, s, 0)),
                pl.BlockSpec((E, Cp), lambda b, s: (0, 0)),
                pl.BlockSpec((1, Cp), lambda b, s: (0, 0)),
            ],
            out_specs=pl.BlockSpec((block_b, Cp), lambda b, s: (b, 0)),
            scratch_shapes=[pltpu.VMEM((block_b, Cp), jnp.float32)],
        ),
        compiler_params=pltpu.CompilerParams(
            dimension_semantics=("parallel", "arbitrary"),
            vmem_limit_bytes=vmem_limit_bytes,
        ),
        cost_estimate=cost,
    )(hidden, w_pad, b_pad)

    return out_pad[:, :C]


def reference(hidden, weight, bias):
    pooled = jnp.sum(hidden.astype(jnp.float32), axis=1)
    logits = pooled @ weight.astype(jnp.float32) + bias.astype(jnp.float32)
    return jax.nn.log_softmax(logits, axis=-1)


if __name__ == "__main__":
    # Small shapes consistent with the module's forward:
    #   batch B=2, sequence S=8, embed E=256 (scaled-down 1024), classes C=5.
    B, S, E, C = 2, 8, 256, 5

    key = jax.random.PRNGKey(0)
    k_h, k_w, k_b = jax.random.split(key, 3)

    # "Transformer hidden states" stand-in (deterministic synthetic input).
    hidden = jax.random.normal(k_h, (B, S, E), dtype=jnp.float32)

    # ClassificationHead = nn.Linear(E, C); PyTorch init: U(-1/sqrt(E), 1/sqrt(E)).
    bound = 1.0 / (E ** 0.5)
    weight = jax.random.uniform(k_w, (E, C), jnp.float32, -bound, bound)
    bias = jax.random.uniform(k_b, (C,), jnp.float32, -bound, bound)

    out = discriminator2_head(hidden, weight, bias)
    out = jax.block_until_ready(out)

    ref = reference(hidden, weight, bias)
    assert out.shape == (B, C)
    assert jnp.allclose(out, ref, atol=1e-5, rtol=1e-5), (
        f"mismatch: max abs err {jnp.max(jnp.abs(out - ref))}")

    print("KERNEL_OK")
</pallas_src>

<mosaic_0001>
module attributes {stable_mosaic.version = 11 : i64} {
  func.func @_disc2_kernel(%arg0: i32, %arg1: i32, %arg2: memref<2x8x256xf32, #tpu.memory_space<vmem>>, %arg3: memref<256x128xf32, #tpu.memory_space<vmem>>, %arg4: memref<1x128xf32, #tpu.memory_space<vmem>>, %arg5: memref<2x128xf32, #tpu.memory_space<vmem>>, %arg6: memref<2x128xf32, #tpu.memory_space<vmem>>) attributes {dimension_semantics = [#tpu.dimension_semantics<parallel>, #tpu.dimension_semantics<arbitrary>], iteration_bounds = array<i64: 1, 1>, scalar_prefetch = 0 : i64, scratch_operands = 1 : i64, tpu.core_type = #tpu.core_type<tc>, window_params = [{transform_indices = @transform_0, window_bounds = array<i64: 2, 8, 256>}, {pipeline_mode = #tpu.pipeline_mode<synchronous>, transform_indices = @transform_1, window_bounds = array<i64: 256, 128>}, {pipeline_mode = #tpu.pipeline_mode<synchronous>, transform_indices = @transform_2, window_bounds = array<i64: 1, 128>}, {transform_indices = @transform_3, window_bounds = array<i64: 2, 128>}]} {
    %c0_i32 = arith.constant 0 : i32
    %0 = arith.cmpi eq, %arg1, %c0_i32 : i32
    %1 = arith.extui %0 : i1 to i32
    %c0_i32_0 = arith.constant 0 : i32
    %2 = arith.cmpi ne, %1, %c0_i32_0 : i32
    scf.if %2 {
      %cst_12 = arith.constant 0.000000e+00 : f32
      %13 = vector.broadcast %cst_12 : f32 to vector<2x128xf32>
      %c0_13 = arith.constant 0 : index
      %c0_14 = arith.constant 0 : index
      %14 = vector.load %arg6[%c0_13, %c0_14] : memref<2x128xf32, #tpu.memory_space<vmem>>, vector<2x128xf32>
      tpu.vector_store %arg6[%c0_13, %c0_14], %13 {strides = array<i32>} : memref<2x128xf32, #tpu.memory_space<vmem>>, vector<2x128xf32>,
    } else {
    }
    %c0 = arith.constant 0 : index
    %c0_1 = arith.constant 0 : index
    %c0_2 = arith.constant 0 : index
    %3 = vector.load %arg2[%c0, %c0_1, %c0_2] : memref<2x8x256xf32, #tpu.memory_space<vmem>>, vector<2x8x256xf32>
    %cst = arith.constant dense<0.000000e+00> : vector<2x256xf32>
    %4 = vector.multi_reduction <add>, %3, %cst [1] : vector<2x8x256xf32> to vector<2x256xf32>
    %c0_3 = arith.constant 0 : index
    %c0_4 = arith.constant 0 : index
    %5 = vector.load %arg6[%c0_3, %c0_4] : memref<2x128xf32, #tpu.memory_space<vmem>>, vector<2x128xf32>
    %c0_5 = arith.constant 0 : index
    %c0_6 = arith.constant 0 : index
    %6 = vector.load %arg3[%c0_5, %c0_6] : memref<256x128xf32, #tpu.memory_space<vmem>>, vector<256x128xf32>
    %cst_7 = arith.constant dense<0.000000e+00> : vector<2x128xf32>
    %7 = tpu.matmul %4, %6, %cst_7 {dimension_numbers = #tpu.dot_dimension_numbers<[1], [0], [0], [1], [0, 0, 1, 1], [], []>} : vector<2x256xf32>, vector<256x128xf32>, vector<2x128xf32> -> vector<2x128xf32>
    %8 = arith.addf %5, %7 : vector<2x128xf32>
    %c0_8 = arith.constant 0 : index
    %c0_9 = arith.constant 0 : index
    %9 = vector.load %arg6[%c0_8, %c0_9] : memref<2x128xf32, #tpu.memory_space<vmem>>, vector<2x128xf32>
    tpu.vector_store %arg6[%c0_8, %c0_9], %8 {strides = array<i32>} : memref<2x128xf32, #tpu.memory_space<vmem>>, vector<2x128xf32>,
    %c0_i32_10 = arith.constant 0 : i32
    %10 = arith.cmpi eq, %arg1, %c0_i32_10 : i32
    %11 = arith.extui %10 : i1 to i32
    %c0_i32_11 = arith.constant 0 : i32
    %12 = arith.cmpi ne, %11, %c0_i32_11 : i32
    scf.if %12 {
      %c0_12 = arith.constant 0 : index
      %c0_13 = arith.constant 0 : index
      %13 = vector.load %arg6[%c0_12, %c0_13] : memref<2x128xf32, #tpu.memory_space<vmem>>, vector<2x128xf32>
      %c0_14 = arith.constant 0 : index
      %c0_15 = arith.constant 0 : index
      %14 = vector.load %arg4[%c0_14, %c0_15] : memref<1x128xf32, #tpu.memory_space<vmem>>, vector<1x128xf32>
      %15 = vector.broadcast %14 : vector<1x128xf32> to vector<2x128xf32>
      %16 = arith.addf %13, %15 : vector<2x128xf32>
      %cst_16 = arith.constant dense<0xFF800000> : vector<2xf32>
      %17 = vector.multi_reduction <maximumf>, %16, %cst_16 [1] : vector<2x128xf32> to vector<2xf32>
      %18 = vector.shape_cast %17 : vector<2xf32> to vector<2x1xf32>
      %19 = vector.broadcast %18 : vector<2x1xf32> to vector<2x128xf32>
      %20 = arith.subf %16, %19 : vector<2x128xf32>
      %21 = math.exp %20 : vector<2x128xf32>
      %cst_17 = arith.constant dense<0.000000e+00> : vector<2xf32>
      %22 = vector.multi_reduction <add>, %21, %cst_17 [1] : vector<2x128xf32> to vector<2xf32>
      %23 = vector.shape_cast %22 : vector<2xf32> to vector<2x1xf32>
      %24 = math.log %23 : vector<2x1xf32>
      %25 = vector.broadcast %24 : vector<2x1xf32> to vector<2x128xf32>
      %26 = arith.subf %20, %25 : vector<2x128xf32>
      %c0_18 = arith.constant 0 : index
      %c0_19 = arith.constant 0 : index
      %27 = vector.load %arg5[%c0_18, %c0_19] : memref<2x128xf32, #tpu.memory_space<vmem>>, vector<2x128xf32>
      tpu.vector_store %arg5[%c0_18, %c0_19], %26 {strides = array<i32>} : memref<2x128xf32, #tpu.memory_space<vmem>>, vector<2x128xf32>,
    } else {
    }
    return
  }
  func.func @transform_0(%arg0: i32, %arg1: i32) -> (i32, i32, i32) {
    %c0_i32 = arith.constant 0 : i32
    %c0_i32_0 = arith.constant 0 : i32
    return %arg0, %arg1, %c0_i32 : i32, i32, i32
  }
  func.func @transform_1(%arg0: i32, %arg1: i32) -> (i32, i32) {
    %c0_i32 = arith.constant 0 : i32
    %c0_i32_0 = arith.constant 0 : i32
    %c0_i32_1 = arith.constant 0 : i32
    return %c0_i32, %c0_i32_0 : i32, i32
  }
  func.func @transform_2(%arg0: i32, %arg1: i32) -> (i32, i32) {
    %c0_i32 = arith.constant 0 : i32
    %c0_i32_0 = arith.constant 0 : i32
    %c0_i32_1 = arith.constant 0 : i32
    return %c0_i32, %c0_i32_0 : i32, i32
  }
  func.func @transform_3(%arg0: i32, %arg1: i32) -> (i32, i32) {
    %c0_i32 = arith.constant 0 : i32
    %c0_i32_0 = arith.constant 0 : i32
    return %arg0, %c0_i32 : i32, i32
  }
}

</mosaic_0001>

<bundles_post_ra>
// kernel: discriminator2_head.1
= control target key start
LH: loop header
LB: loop body
LE: loop exit
PB: predicated region body
PF: predicated region fallthrough
CT: control target
= control target key end

     0   :  { %s404_s0 = inlined_call_operand.vmem [shape: f32[2,8,256], index: 0, kind: input, shape index: {}]   ;;  %s405_s1 = inlined_call_operand.vmem [shape: f32[256,128], index: 1, kind: input, shape index: {}]   ;;  %s406_s2 = inlined_call_operand.vmem [shape: f32[1,128], index: 2, kind: input, shape index: {}]   ;;  %s407_s3 = inlined_call_operand.hbm [shape: f32[2,128], index: 3, kind: output, shape index: {}]  }
   0x1   :  { %v80_v0 = vld [vmem:[%s405_s1 + $0xf8] sm:$0xff]  ;;  %v79_v2 = vld [vmem:[%s405_s1 + $0xf0] sm:$0xff]  ;;  %v78_v4 = vld [vmem:[%s405_s1 + $0xe8] sm:$0xff] }
   0x2   :  { %v64_v1 = vld [vmem:[%s405_s1 + $0x78] sm:$0xff]  ;;  %203 = vmatprep.subr.mxu0 %v80_v0  ;;  %v63_v3 = vld [vmem:[%s405_s1 + $0x70] sm:$0xff]  ;;  %v62_v5 = vld [vmem:[%s405_s1 + $0x68] sm:$0xff] }
   0x3   :  { %204 = vmatpush3.msra.mxu0 %v64_v1  ;;  %v77_v6 = vld [vmem:[%s405_s1 + $0xe0] sm:$0xff]  ;;  %v76_v8 = vld [vmem:[%s405_s1 + $0xd8] sm:$0xff]  ;;  %v75_v10 = vld [vmem:[%s405_s1 + $0xd0] sm:$0xff] }
   0x4   :  { %205 = vmatprep.subr.mxu0 %v79_v2  ;;  %v61_v7 = vld [vmem:[%s405_s1 + $0x60] sm:$0xff]  ;;  %v60_v9 = vld [vmem:[%s405_s1 + $0x58] sm:$0xff]  ;;  %v59_v11 = vld [vmem:[%s405_s1 + $0x50] sm:$0xff] }
   0x5   :  { %206 = vmatpush3.msra.mxu0 %v63_v3  ;;  %v74_v12 = vld [vmem:[%s405_s1 + $0xc8] sm:$0xff]  ;;  %v23_v15 = vld [vmem:[%s404_s0 + $0x18] sm:$0xff]  ;;  %v20_v17 = vld [vmem:[%s404_s0] sm:$0xff] }
   0x6   :  { %207 = vmatprep.subr.mxu0 %v78_v4  ;;  %v58_v13 = vld [vmem:[%s405_s1 + $0x48] sm:$0xff]  ;;  %v22_v18 = vld [vmem:[%s404_s0 + $0x10] sm:$0xff]  ;;  %v73_v19 = vld [vmem:[%s405_s1 + $0xc0] sm:$0xff]  ;;  %v42_v20 = vrot.slane %v23_v15, 4  ;;  %v24_v21 = vrot.slane %v20_v17, 4 }
   0x7   :  { %208 = vmatpush3.msra.mxu0 %v62_v5  ;;  %v21_v14 = vld [vmem:[%s404_s0 + $0x8] sm:$0xff]  ;;  %v36_v22 = vrot.slane %v22_v18, 4 }
   0x8   :  { %209 = vmatprep.subr.mxu0 %v77_v6  ;;  %v30_v16 = vrot.slane %v21_v14, 4 }
   0x9   :  { %210 = vmatpush3.msra.mxu0 %v61_v7 }
   0xa   :  { %211 = vmatprep.subr.mxu0 %v76_v8 }
   0xb   :  { %212 = vmatpush3.msra.mxu0 %v60_v9 }
   0xc   :  { %213 = vmatprep.subr.mxu0 %v75_v10 }
   0xd   :  { %214 = vmatpush3.msra.mxu0 %v59_v11 }
   0xe   :  { %8 = vsyncpa [#allocation4], 0  ;;  %215 = vmatprep.subr.mxu0 %v74_v12  ;;  %v57_v23 = vld [vmem:[%s405_s1 + $0x40] sm:$0xff]  ;;  %v31_v24 = vadd.f32 %v30_v16, %v21_v14  ;;  %v72_v25 = vld [vmem:[%s405_s1 + $0xb8] sm:$0xff]  ;;  %v43_v26 = vadd.f32 %v42_v20, %v23_v15  ;;  %v25_v27 = vadd.f32 %v24_v21, %v20_v17  ;;  %v37_v28 = vadd.f32 %v36_v22, %v22_v18 }
   0xf   :  { %216 = vmatpush3.msra.mxu0 %v58_v13  ;;  %v56_v29 = vld [vmem:[%s405_s1 + $0x38] sm:$0xff]  ;;  %v71_v31 = vld [vmem:[%s405_s1 + $0xb0] sm:$0xff]  ;;  %v70_v37 = vld [vmem:[%s405_s1 + $0xa8] sm:$0xff]  ;;  %vm85_vm0 = vcmask 1041409   ;;  %v266_v62 = vmov 0.0   ;;  %vm174_vm1 = vcmask 1041408  }
  0x10   :  { %217 = vmatprep.subr.mxu0 %v73_v19  ;;  %v32_v30 = vrot.slane %v31_v24, 2  ;;  %v44_v32 = vrot.slane %v43_v26, 2  ;;  %v26_v33 = vrot.slane %v25_v27, 2  ;;  %v38_v34 = vrot.slane %v37_v28, 2  ;;  %v55_v35 = vld [vmem:[%s405_s1 + $0x30] sm:$0xff]  ;;  %v54_v41 = vld [vmem:[%s405_s1 + $0x28] sm:$0xff] }
  0x11   :  { %218 = vmatpush3.msra.mxu0 %v57_v23  ;;  %v69_v43 = vld [vmem:[%s405_s1 + $0xa0] sm:$0xff]  ;;  %v68_v47 = vld [vmem:[%s405_s1 + $0x98] sm:$0xff]  ;;  %v67_v52 = vld [vmem:[%s405_s1 + $0x90] sm:$0xff]  ;;  %19 = vst [vmem:[#allocation2] sm:$0x3] %v266_v62 }
  0x12   :  { %219 = vmatprep.subr.mxu0 %v72_v25  ;;  %v33_v36 = vadd.f32 %v32_v30, %v31_v24  ;;  %v45_v38 = vadd.f32 %v44_v32, %v43_v26  ;;  %v27_v39 = vadd.f32 %v26_v33, %v25_v27  ;;  %v39_v40 = vadd.f32 %v38_v34, %v37_v28  ;;  %v53_v45 = vld [vmem:[%s405_s1 + $0x20] sm:$0xff]  ;;  %v52_v51 = vld [vmem:[%s405_s1 + $0x18] sm:$0xff]  ;;  %v51_v54 = vld [vmem:[%s405_s1 + $0x10] sm:$0xff] }
  0x13   :  { %220 = vmatpush3.msra.mxu0 %v56_v29  ;;  %v66_v55 = vld [vmem:[%s405_s1 + $0x88] sm:$0xff]  ;;  %v65_v59 = vld [vmem:[%s405_s1 + $0x80] sm:$0xff] }
  0x14   :  { %221 = vmatprep.subr.mxu0 %v71_v31  ;;  %v34_v42 = vrot.slane %v33_v36, 1  ;;  %v46_v44 = vrot.slane %v45_v38, 1  ;;  %v28_v49 = vrot.slane %v27_v39, 1  ;;  %v40_v50 = vrot.slane %v39_v40, 1  ;;  %v50_v58 = vld [vmem:[%s405_s1 + $0x8] sm:$0xff]  ;;  %v49_v60 = vld [vmem:[%s405_s1] sm:$0xff] }
  0x15   :  { %222 = vmatpush3.msra.mxu0 %v55_v35  ;;  %v202_v4 = vld [vmem:[%s406_s2] ss:$0 sm:$0xff]  ;;  %s267_s1 = smov [#allocation3]  }
  0x16   :  { %223 = vmatprep.subr.mxu0 %v70_v37  ;;  %v35_v46 = vadd.f32 %v34_v42, %v33_v36  ;;  %v47_v48 = vadd.f32 %v46_v44, %v45_v38  ;;  %v29_v56 = vadd.f32 %v28_v49, %v27_v39  ;;  %v41_v57 = vadd.f32 %v40_v50, %v39_v40  ;;  %s194_s30 = sshll.u32 %s267_s1, 4  ;;  %s195_s30 = int_to_ptr.vmem [resolvable:$true] %s194_s30 }
  0x17   :  { %224 = vmatpush3.msra.mxu0 %v54_v41  ;;  %s244_s2 = scalar_lea.vmem %s195_s30, 32  ;;  %p249_p1 = scmp.lt.s32.totalorder %s195_s30, %s195_s30 }
  0x18   :  { %225 = vmatprep.subr.mxu0 %v69_v43  ;;  %v87_v53 = vsel %vm85_vm0, %v47_v48, %v35_v46  ;;  %v86_v61 = vsel %vm85_vm0, %v41_v57, %v29_v56  ;;  %v48_v0 = vld [vmem:[#allocation2] sm:$0x3]  ;;  %p245_p0 = scmp.ne.s32.totalorder %s195_s30, %s244_s2  ;;  %p250_p2 = scmp.lt.s32.totalorder %s244_s2, %s244_s2 }
  0x19   :  { %226 = vmatpush3.msra.mxu0 %v53_v45  ;;  %154 = vmatprep.mubr.f32.mxu0 %v87_v53 }
  0x1a   :  { %227 = vmatprep.subr.mxu0 %v68_v47  ;;  %p251_p3 = por %p250_p2, %p249_p1 }
  0x1b   :  { %228 = vmatpush3.msra.mxu0 %v52_v51 }
  0x1c   :  { %229 = vmatprep.subr.mxu0 %v67_v52  ;;  %p252_p4 = pnand %p251_p3, %p245_p0 }
  0x1d   :  { %230 = vmatpush3.msra.mxu0 %v51_v54 }
  0x1e   :  { %231 = vmatprep.subr.mxu0 %v66_v55 }
  0x1f   :  { %232 = vmatpush3.msra.mxu0 %v50_v58 }
  0x20   :  { %233 = vmatprep.subr.mxu0 %v65_v59 }
  0x21   :  { %234 = vmatpush3.msra.mxu0 %v49_v60 }
  0x22   :  { %155 = vmatmul.mubr.f32.vlgmr.msra.gmra.mxu0 %v86_v61 }
  0xe2   :  { %v235_v63 = vpop.f32.mrf.mxu0 }
  0xe4   :  { %v236_v1 = vpop.f32.mrf.mxu0 }
  0xe5   :  { %v237_v2 = vadd.f32 %v236_v1, %v235_v63 }
  0xe7   :  { %v160_v3 = vadd.f32 %v237_v2, %v48_v0 }
  0xe9   :  { %161 = vst [vmem:[#allocation2] sm:$0x3] %v160_v3 }
  0xf0   :  { %v165_v5 = vld [vmem:[#allocation2] sm:$0x3] }
  0xf1   :  { %v173_v6 = vadd.f32 %v202_v4, %v165_v5 }
  0xf3   :  { %v175_v7 = vsel %vm174_vm1, %v173_v6, -inf }
  0xf4   :  { %176 = vmax.xlane.f32.xlu0 %v175_v7 }
 0x17d   :  { %v177_v8 = vpop.xlane.xlu0 %176 }
 0x17e   :  { %v178_v9 = vsub.f32 %v173_v6, %v177_v8 }
 0x180   :  { %v179_v10 = vmul.f32 1.442695, %v178_v9 }
 0x182   :  { %240 = vpow2.f32 %v179_v10 }
 0x18f   :  { %v241_v11 = vpop.eup %240 }
 0x190   :  { %v181_v12 = vsel %vm174_vm1, %v241_v11, 0.0 }
 0x191   :  { %182 = vadd.xlane.f32.xlu0 %v181_v12 }
 0x21a   :  { %v183_v13 = vpop.xlane.xlu0 %182 }
 0x21b   :  { %242 = vlog2.f32 %v183_v13 }
 0x228   :  { %v243_v14 = vpop.eup %242 }
 0x229   :  { %v185_v15 = vmul.f32 0.6931472, %v243_v14 }
 0x22b   :  { %v186_v16 = vsub.f32 %v178_v9, %v185_v15 }
 0x22d   :  { %187 = vst [vmem:[#allocation3] sm:$0x3] %v186_v16 }
 0x22e   :  { %255 = shalt.err (!%p252_p4)
}
 0x22f   :  { %197 = dma.vmem_to_hbm [thread:$0]  %s195_s30, 32, %s407_s3, [#allocation4]  }
 0x230   :  { %264 = dma.done.wait [#allocation4], 32  }
 0x231   :  { %265 = vsyncadd [#allocation4], 4294967264 }
 0x232   :  { %201 = vsyncpa [#allocation4], 1 }

</bundles_post_ra>
